<compile_context>
chip_gen: v6e
topology: v6e:2x2x1
jax: 0.10.0
libtpu: 0.0.40
codegen_flags: <defaults>
</compile_context>

<pallas_src>
import functools

import jax
import jax.numpy as jnp
from jax.experimental import pallas as pl
from jax.experimental.pallas import tpu as pltpu


# ----------------------------------------------------------------------------
# Small helpers
# ----------------------------------------------------------------------------
def _round_up(x, m):
    return ((x + m - 1) // m) * m


def _tile_and_pad(dim, pref, granule):
    """Pick tile = min(pref, round_up(dim, granule)) and pad dim to a multiple."""
    tile = min(pref, _round_up(dim, granule))
    return tile, _round_up(dim, tile)


def _pick_time_block(S, B_blk, G, budget_bytes=8 * 1024 * 1024):
    """Timesteps per grid step, sized so one gx pipeline buffer <= budget."""
    per_step = B_blk * G * 2                         # bf16 bytes per timestep
    max_t = max(8, (budget_bytes // per_step) // 8 * 8)
    t_blk = min(64, max_t, _round_up(S, 8))
    return max(8, (t_blk // 8) * 8)


def _clamp_vmem(need_bytes):
    return int(min(max(int(1.5 * need_bytes), 32 * 1024 * 1024), 64 * 1024 * 1024))


# ----------------------------------------------------------------------------
# Tiled matmul + bias kernel: (M, K) @ (K, N) + (1, N)   (bf16 in, f32 acc)
# Used for (a) the hoisted LSTM input projections and (b) the fused decoders.
# ----------------------------------------------------------------------------
def matmul_bias_kernel(x_ref, w_ref, b_ref, o_ref, acc_ref):
    @pl.when(pl.program_id(2) == 0)
    def _():
        acc_ref[...] = jnp.zeros_like(acc_ref)

    acc_ref[...] += jnp.dot(x_ref[...], w_ref[...],
                            preferred_element_type=jnp.float32)

    @pl.when(pl.program_id(2) == pl.num_programs(2) - 1)
    def _():
        o_ref[...] = (acc_ref[...] + b_ref[...]).astype(o_ref.dtype)


def matmul_bias(x, w, b, *, out_dtype=jnp.float32,
                tm_pref=512, tn_pref=512, tk_pref=512):
    """x:(M,K), w:(K,N), b:(1,N). Inputs cast to bf16; f32 accumulation + bias."""
    M, K = x.shape
    _, N = w.shape
    tm, M_pad = _tile_and_pad(M, tm_pref, 16)    # bf16 sublane granule
    tn, N_pad = _tile_and_pad(N, tn_pref, 128)
    tk, K_pad = _tile_and_pad(K, tk_pref, 128)

    x_p = jnp.zeros((M_pad, K_pad), jnp.bfloat16).at[:M, :K].set(
        x.astype(jnp.bfloat16))
    w_p = jnp.zeros((K_pad, N_pad), jnp.bfloat16).at[:K, :N].set(
        w.astype(jnp.bfloat16))
    b_p = jnp.zeros((1, N_pad), jnp.float32).at[:, :N].set(b.astype(jnp.float32))

    grid = (M_pad // tm, N_pad // tn, K_pad // tk)
    out_bytes = jnp.dtype(out_dtype).itemsize
    need = (2 * (tm * tk + tk * tn) * 2 + 2 * tn * 4     # x/w (bf16) + bias, 2-buf
            + 2 * tm * tn * out_bytes                     # output, 2-buf
            + tm * tn * 4)                                # f32 accumulator
    out = pl.pallas_call(
        matmul_bias_kernel,
        out_shape=jax.ShapeDtypeStruct((M_pad, N_pad), out_dtype),
        grid_spec=pltpu.PrefetchScalarGridSpec(
            num_scalar_prefetch=0,
            grid=grid,
            in_specs=[
                pl.BlockSpec((tm, tk), lambda i, j, k: (i, k)),
                pl.BlockSpec((tk, tn), lambda i, j, k: (k, j)),
                pl.BlockSpec((1, tn), lambda i, j, k: (0, j)),
            ],
            out_specs=pl.BlockSpec((tm, tn), lambda i, j, k: (i, j)),
            scratch_shapes=[pltpu.VMEM((tm, tn), jnp.float32)],
        ),
        compiler_params=pltpu.CompilerParams(
            dimension_semantics=("parallel", "parallel", "arbitrary"),
            vmem_limit_bytes=_clamp_vmem(need)),
    )(x_p, w_p, b_p)
    return out[:M, :N]


# ----------------------------------------------------------------------------
# Recurrent LSTM kernel.
#   gx  : (S_pad, B_pad, 4H)  bf16 precomputed  X @ W_ih + bias  (gate order i,f,g,o)
#   grid: (n_b_splits, S_pad // t_blk): batch halves "parallel" (v7x 2xTC),
#         time blocks "arbitrary" (sequential).
#   whh / h0 / c0 have constant-in-time index maps -> fetched once per core.
#   Output is seq-major (S_pad, B_pad, H) bf16 with dense per-step (B,H) stores.
# ----------------------------------------------------------------------------
def lstm_recurrent_kernel(gx_ref, h0_ref, c0_ref, whh_ref,
                          out_ref, hN_ref, cN_ref, h_sc, c_sc,
                          *, t_blk, seq_len, need_mask):
    t = pl.program_id(1)

    @pl.when(t == 0)
    def _():
        h_sc[...] = h0_ref[...]
        c_sc[...] = c0_ref[...]

    H = h_sc.shape[-1]                 # padded to a multiple of 128
    whh = whh_ref[...]                 # (H, 4H) bf16, resident for the whole block

    def body(s, carry):
        h, c = carry                   # f32 (B, H)
        gates = gx_ref[s].astype(jnp.float32) + jnp.dot(
            h.astype(jnp.bfloat16), whh, preferred_element_type=jnp.float32)
        i_g = jax.nn.sigmoid(gates[:, 0 * H:1 * H])
        f_g = jax.nn.sigmoid(gates[:, 1 * H:2 * H])
        g_g = jnp.tanh(gates[:, 2 * H:3 * H])
        o_g = jax.nn.sigmoid(gates[:, 3 * H:4 * H])
        c_new = f_g * c + i_g * g_g
        h_new = o_g * jnp.tanh(c_new)
        if need_mask:                  # static flag: only when S was padded
            valid = (t * t_blk + s) < seq_len
            h_new = jnp.where(valid, h_new, h)
            c_new = jnp.where(valid, c_new, c)
        out_ref[s] = h_new.astype(out_ref.dtype)    # dense (B, H) slab store
        return h_new, c_new

    h, c = jax.lax.fori_loop(0, t_blk, body, (h_sc[...], c_sc[...]), unroll=True)
    h_sc[...] = h
    c_sc[...] = c

    @pl.when(t == pl.num_programs(1) - 1)
    def _():
        hN_ref[...] = h
        cN_ref[...] = c


def lstm_recurrent(gx, h0, c0, whh_bf16, *, t_blk, seq_len, n_b_splits):
    """gx: (S_pad, B_pad, 4H) bf16; h0,c0: (B_pad, H) f32; whh: (H, 4H) bf16."""
    S_pad, B_pad, G = gx.shape
    H = h0.shape[-1]
    n_blk = S_pad // t_blk
    B_blk = B_pad // n_b_splits

    kernel = functools.partial(lstm_recurrent_kernel, t_blk=t_blk,
                               seq_len=seq_len, need_mask=(S_pad != seq_len))

    need = (2 * t_blk * B_blk * G * 2        # gx block, double buffered (bf16)
            + 2 * H * G * 2                  # whh (bf16), double buffered
            + 2 * 2 * B_blk * H * 4          # h0, c0 (f32)
            + 2 * t_blk * B_blk * H * 2      # out block, double buffered (bf16)
            + 2 * 2 * B_blk * H * 4          # hN, cN
            + 2 * B_blk * H * 4)             # h/c scratch

    return pl.pallas_call(
        kernel,
        out_shape=(jax.ShapeDtypeStruct((S_pad, B_pad, H), jnp.bfloat16),
                   jax.ShapeDtypeStruct((B_pad, H), jnp.float32),   # final h
                   jax.ShapeDtypeStruct((B_pad, H), jnp.float32)),  # final c
        grid_spec=pltpu.PrefetchScalarGridSpec(
            num_scalar_prefetch=0,
            grid=(n_b_splits, n_blk),
            in_specs=[
                pl.BlockSpec((t_blk, B_blk, G), lambda p, t: (t, p, 0)),
                # constant-in-time index maps: fetched once per core
                pl.BlockSpec((B_blk, H), lambda p, t: (p, 0)),
                pl.BlockSpec((B_blk, H), lambda p, t: (p, 0)),
                pl.BlockSpec((H, G), lambda p, t: (0, 0)),
            ],
            out_specs=(
                pl.BlockSpec((t_blk, B_blk, H), lambda p, t: (t, p, 0)),
                pl.BlockSpec((B_blk, H), lambda p, t: (p, 0)),
                pl.BlockSpec((B_blk, H), lambda p, t: (p, 0)),
            ),
            scratch_shapes=[pltpu.VMEM((B_blk, H), jnp.float32),
                            pltpu.VMEM((B_blk, H), jnp.float32)],
        ),
        compiler_params=pltpu.CompilerParams(
            dimension_semantics=("parallel", "arbitrary"),
            vmem_limit_bytes=_clamp_vmem(need)),
    )(gx, h0, c0, whh_bf16)


# ----------------------------------------------------------------------------
# Zero-padding of parameters to tile-aligned shapes (exact-math padding:
# padded gate columns get zero weights/bias -> padded h/c columns stay 0).
# ----------------------------------------------------------------------------
def _pad_lstm_params(wih, whh, b, in_pad, H, H_pad):
    in_sz = wih.shape[0]
    wih_p = jnp.zeros((in_pad, 4 * H_pad), jnp.float32)
    whh_p = jnp.zeros((H_pad, 4 * H_pad), jnp.float32)
    b_p = jnp.zeros((1, 4 * H_pad), jnp.float32)
    for g in range(4):  # gate blocks land on 128-aligned column boundaries
        wih_p = wih_p.at[:in_sz, g * H_pad:g * H_pad + H].set(wih[:, g * H:(g + 1) * H])
        whh_p = whh_p.at[:H, g * H_pad:g * H_pad + H].set(whh[:, g * H:(g + 1) * H])
        b_p = b_p.at[:, g * H_pad:g * H_pad + H].set(b[:, g * H:(g + 1) * H])
    return wih_p, whh_p, b_p


def _build_fused_decoder(decoders, H, H_pad):
    """Concatenate all decoder weights along the vocab axis (each 128-padded)."""
    w_blocks, b_blocks, spans = [], [], []
    off = 0
    for w, bias in decoders:
        T = w.shape[1]
        T_pad = _round_up(T, 128)
        w_blocks.append(jnp.zeros((H_pad, T_pad), jnp.float32).at[:H, :T].set(w))
        b_blocks.append(jnp.zeros((1, T_pad), jnp.float32).at[:, :T].set(bias))
        spans.append((off, T))
        off += T_pad
    return (jnp.concatenate(w_blocks, axis=1),
            jnp.concatenate(b_blocks, axis=1),
            spans)


# ----------------------------------------------------------------------------
# CRNNModel forward (eval mode, dropout = identity)
# ----------------------------------------------------------------------------
def crnn_forward(params, inputs, conditions, hidden):
    """
    inputs, conditions: lists (len = num_channels) of int32 arrays (batch, seq)
    hidden: (h0, c0), each (nlayers, batch, nhid)
    Returns (decs, (h_n, c_n)); decs[i] has shape (batch, seq, ntokens[i]).
    """
    num_channels = len(inputs)
    cond_emb = params['encoders'][num_channels]          # condition embedding table

    # --- embeddings + concat (glue, plain JAX) ---------------------------------
    emb_conds = []
    for i in range(num_channels):
        tok_t = inputs[i].T        # (seq, batch)
        cond_t = conditions[i].T   # (seq, batch)
        emb = params['encoders'][i][tok_t]      # (S, B, emsize)
        emb_c = cond_emb[cond_t]                # (S, B, emsize)
        emb_conds.append(jnp.concatenate([emb, emb_c], axis=2))
    rnn_input = jnp.concatenate(emb_conds, axis=2)        # (S, B, num_channels*2*emsize)

    S, B, I = rnn_input.shape
    h0, c0 = hidden
    nlayers, _, H = h0.shape

    # --- lane/sublane-aligned padding (bf16: batch granule 16) -------------------
    B_pad = _round_up(B, 16)
    H_pad = _round_up(H, 128)
    I_pad = _round_up(I, 128)
    n_b_splits = 2 if (B_pad % 32 == 0) else 1      # v7x: split batch over 2 TCs
    B_blk = B_pad // n_b_splits
    G = 4 * H_pad
    t_blk = _pick_time_block(S, B_blk, G)
    S_pad = _round_up(S, t_blk)

    x = jnp.zeros((S_pad, B_pad, I_pad), jnp.float32).at[:S, :B, :I].set(rnn_input)
    h0p = jnp.zeros((nlayers, B_pad, H_pad), jnp.float32).at[:, :B, :H].set(h0)
    c0p = jnp.zeros((nlayers, B_pad, H_pad), jnp.float32).at[:, :B, :H].set(c0)

    # --- multi-layer LSTM: hoisted input projection + recurrent kernel ----------
    h_finals, c_finals = [], []
    for l, (wih, whh, b) in enumerate(params['lstm']):
        in_pad = x.shape[-1]
        wih_p, whh_p, b_p = _pad_lstm_params(wih, whh, b, in_pad, H, H_pad)

        # One big bf16 (S*B, in) @ (in, 4H) matmul for all timesteps; gx in bf16.
        gx = matmul_bias(x.reshape(S_pad * B_pad, in_pad), wih_p, b_p,
                         out_dtype=jnp.bfloat16)
        gx = gx.reshape(S_pad, B_pad, G)

        x, h_n, c_n = lstm_recurrent(gx, h0p[l], c0p[l],
                                     whh_p.astype(jnp.bfloat16),
                                     t_blk=t_blk, seq_len=S,
                                     n_b_splits=n_b_splits)
        h_finals.append(h_n[:B, :H])
        c_finals.append(c_n[:B, :H])

    h_n = jnp.stack(h_finals, axis=0)
    c_n = jnp.stack(c_finals, axis=0)

    # (S,B,H)->(B,S,H) on the small bf16 hidden tensor (matches torch.transpose).
    out_bsh = jnp.transpose(x, (1, 0, 2))                 # (B_pad, S_pad, H_pad) bf16

    # --- fused decoders (one tiled bf16 matmul over all channels) ----------------
    flat = out_bsh.reshape(B_pad * S_pad, H_pad)
    w_cat, b_cat, spans = _build_fused_decoder(params['decoders'], H, H_pad)
    dec_all = matmul_bias(flat, w_cat, b_cat, out_dtype=jnp.float32)
    dec_all = dec_all.reshape(B_pad, S_pad, dec_all.shape[-1])
    decs = [dec_all[:B, :S, off:off + T] for (off, T) in spans]
    return decs, (h_n, c_n)


# ----------------------------------------------------------------------------
# Pure-JAX f32 reference (for correctness check)
# ----------------------------------------------------------------------------
def crnn_forward_ref(params, inputs, conditions, hidden):
    num_channels = len(inputs)
    cond_emb = params['encoders'][num_channels]
    emb_conds = []
    for i in range(num_channels):
        emb = params['encoders'][i][inputs[i].T]
        emb_c = cond_emb[conditions[i].T]
        emb_conds.append(jnp.concatenate([emb, emb_c], axis=2))
    x = jnp.concatenate(emb_conds, axis=2)

    h0, c0 = hidden
    h_finals, c_finals = [], []
    for l, (wih, whh, b) in enumerate(params['lstm']):
        H = h0.shape[-1]

        def step(carry, x_t):
            h, c = carry
            gates = x_t @ wih + h @ whh + b[0]
            i_g = jax.nn.sigmoid(gates[:, 0 * H:1 * H])
            f_g = jax.nn.sigmoid(gates[:, 1 * H:2 * H])
            g_g = jnp.tanh(gates[:, 2 * H:3 * H])
            o_g = jax.nn.sigmoid(gates[:, 3 * H:4 * H])
            c_new = f_g * c + i_g * g_g
            h_new = o_g * jnp.tanh(c_new)
            return (h_new, c_new), h_new

        (h_n, c_n), x = jax.lax.scan(step, (h0[l], c0[l]), x)
        h_finals.append(h_n)
        c_finals.append(c_n)
    out_bt = jnp.transpose(x, (1, 0, 2))
    B, S, H = out_bt.shape
    flat = out_bt.reshape(B * S, H)
    decs = []
    for i in range(num_channels):
        w, b = params['decoders'][i]
        dec = flat @ w + b[0]
        decs.append(dec.reshape(B, S, dec.shape[1]))
    return decs, (jnp.stack(h_finals), jnp.stack(c_finals))


# ----------------------------------------------------------------------------
# Deterministic parameter construction
# ----------------------------------------------------------------------------
def make_params(key, *, ntokens, emsize, nhid, nlayers, num_conditions):
    num_channels = len(ntokens)
    keys = jax.random.split(key, 64)
    k = iter(keys)

    encoders = []
    for i in range(num_channels):
        encoders.append(0.1 * jax.random.normal(next(k), (ntokens[i], emsize),
                                                jnp.float32))
    # condition embedding (encoder_{num_channels})
    encoders.append(0.1 * jax.random.normal(next(k), (num_conditions, emsize),
                                            jnp.float32))

    lstm = []
    input_size = num_channels * 2 * emsize
    for l in range(nlayers):
        in_sz = input_size if l == 0 else nhid
        wih = 0.1 * jax.random.normal(next(k), (in_sz, 4 * nhid), jnp.float32)
        whh = 0.1 * jax.random.normal(next(k), (nhid, 4 * nhid), jnp.float32)
        b = 0.1 * jax.random.normal(next(k), (1, 4 * nhid), jnp.float32)
        lstm.append((wih, whh, b))

    decoders = []
    for i in range(num_channels):
        w = 0.1 * jax.random.normal(next(k), (nhid, ntokens[i]), jnp.float32)
        b = jnp.zeros((1, ntokens[i]), jnp.float32)   # bias.data.fill_(0)
        decoders.append((w, b))

    return {'encoders': encoders, 'lstm': lstm, 'decoders': decoders}


if __name__ == "__main__":
    # Small, module-consistent shapes.
    batch = 2
    seq = 8
    emsize = 16
    nhid = 32
    nlayers = 2
    ntokens = [48, 40]          # two channels
    num_conditions = 8
    num_channels = len(ntokens)

    root = jax.random.PRNGKey(0)
    kp, kd, kc = jax.random.split(root, 3)
    params = make_params(kp, ntokens=ntokens, emsize=emsize, nhid=nhid,
                         nlayers=nlayers, num_conditions=num_conditions)

    data_keys = jax.random.split(kd, num_channels)
    cond_keys = jax.random.split(kc, num_channels)
    inputs = [jax.random.randint(data_keys[i], (batch, seq), 0, ntokens[i],
                                 dtype=jnp.int32) for i in range(num_channels)]
    conditions = [jax.random.randint(cond_keys[i], (batch, seq), 0, num_conditions,
                                     dtype=jnp.int32) for i in range(num_channels)]

    # init_hidden: zeros (LSTM -> (h0, c0))
    h0 = jnp.zeros((nlayers, batch, nhid), jnp.float32)
    c0 = jnp.zeros((nlayers, batch, nhid), jnp.float32)

    decs, (h_n, c_n) = crnn_forward(params, inputs, conditions, (h0, c0))
    decs = [jax.block_until_ready(d) for d in decs]
    h_n = jax.block_until_ready(h_n)
    c_n = jax.block_until_ready(c_n)

    # Correctness check against pure-JAX f32 reference (kernel runs bf16 matmuls,
    # so the tolerance is set for bf16 pre-activation precision).
    ref_decs, (ref_h, ref_c) = crnn_forward_ref(params, inputs, conditions, (h0, c0))
    tol = dict(rtol=2e-2, atol=2e-2)
    for i in range(num_channels):
        assert decs[i].shape == (batch, seq, ntokens[i]), decs[i].shape
        assert jnp.allclose(decs[i], ref_decs[i], **tol)
    assert jnp.allclose(h_n, ref_h, **tol)
    assert jnp.allclose(c_n, ref_c, **tol)

    print("KERNEL_OK")
</pallas_src>

<mosaic_0001>
module attributes {stable_mosaic.version = 11 : i64} {
  func.func @matmul_bias_kernel(%arg0: i32, %arg1: i32, %arg2: i32, %arg3: memref<128x128xbf16, #tpu.memory_space<vmem>>, %arg4: memref<128x512xbf16, #tpu.memory_space<vmem>>, %arg5: memref<1x512xf32, #tpu.memory_space<vmem>>, %arg6: memref<128x512xbf16, #tpu.memory_space<vmem>>, %arg7: memref<128x512xf32, #tpu.memory_space<vmem>>) attributes {dimension_semantics = [#tpu.dimension_semantics<parallel>, #tpu.dimension_semantics<parallel>, #tpu.dimension_semantics<arbitrary>], iteration_bounds = array<i64: 1, 1, 1>, scalar_prefetch = 0 : i64, scratch_operands = 1 : i64, tpu.core_type = #tpu.core_type<tc>, window_params = [{transform_indices = @transform_0, window_bounds = array<i64: 128, 128>}, {transform_indices = @transform_1, window_bounds = array<i64: 128, 512>}, {transform_indices = @transform_2, window_bounds = array<i64: 1, 512>}, {transform_indices = @transform_3, window_bounds = array<i64: 128, 512>}]} {
    %c0_i32 = arith.constant 0 : i32
    %0 = arith.cmpi eq, %arg2, %c0_i32 : i32
    %1 = arith.extui %0 : i1 to i32
    %c0_i32_0 = arith.constant 0 : i32
    %2 = arith.cmpi ne, %1, %c0_i32_0 : i32
    scf.if %2 {
      %cst_10 = arith.constant 0.000000e+00 : f32
      %12 = vector.broadcast %cst_10 : f32 to vector<128x512xf32>
      %c0_11 = arith.constant 0 : index
      %c0_12 = arith.constant 0 : index
      %13 = vector.load %arg7[%c0_11, %c0_12] : memref<128x512xf32, #tpu.memory_space<vmem>>, vector<128x512xf32>
      tpu.vector_store %arg7[%c0_11, %c0_12], %12 {strides = array<i32>} : memref<128x512xf32, #tpu.memory_space<vmem>>, vector<128x512xf32>,
    } else {
    }
    %c0 = arith.constant 0 : index
    %c0_1 = arith.constant 0 : index
    %3 = vector.load %arg7[%c0, %c0_1] : memref<128x512xf32, #tpu.memory_space<vmem>>, vector<128x512xf32>
    %c0_2 = arith.constant 0 : index
    %c0_3 = arith.constant 0 : index
    %4 = vector.load %arg3[%c0_2, %c0_3] : memref<128x128xbf16, #tpu.memory_space<vmem>>, vector<128x128xbf16>
    %c0_4 = arith.constant 0 : index
    %c0_5 = arith.constant 0 : index
    %5 = vector.load %arg4[%c0_4, %c0_5] : memref<128x512xbf16, #tpu.memory_space<vmem>>, vector<128x512xbf16>
    %cst = arith.constant dense<0.000000e+00> : vector<128x512xf32>
    %6 = tpu.matmul %4, %5, %cst {dimension_numbers = #tpu.dot_dimension_numbers<[1], [0], [0], [1], [0, 0, 1, 1], [], []>} : vector<128x128xbf16>, vector<128x512xbf16>, vector<128x512xf32> -> vector<128x512xf32>
    %7 = arith.addf %3, %6 : vector<128x512xf32>
    %c0_6 = arith.constant 0 : index
    %c0_7 = arith.constant 0 : index
    %8 = vector.load %arg7[%c0_6, %c0_7] : memref<128x512xf32, #tpu.memory_space<vmem>>, vector<128x512xf32>
    tpu.vector_store %arg7[%c0_6, %c0_7], %7 {strides = array<i32>} : memref<128x512xf32, #tpu.memory_space<vmem>>, vector<128x512xf32>,
    %c0_i32_8 = arith.constant 0 : i32
    %9 = arith.cmpi eq, %arg2, %c0_i32_8 : i32
    %10 = arith.extui %9 : i1 to i32
    %c0_i32_9 = arith.constant 0 : i32
    %11 = arith.cmpi ne, %10, %c0_i32_9 : i32
    scf.if %11 {
      %c0_10 = arith.constant 0 : index
      %c0_11 = arith.constant 0 : index
      %12 = vector.load %arg7[%c0_10, %c0_11] : memref<128x512xf32, #tpu.memory_space<vmem>>, vector<128x512xf32>
      %c0_12 = arith.constant 0 : index
      %c0_13 = arith.constant 0 : index
      %13 = vector.load %arg5[%c0_12, %c0_13] : memref<1x512xf32, #tpu.memory_space<vmem>>, vector<1x512xf32>
      %14 = vector.broadcast %13 : vector<1x512xf32> to vector<128x512xf32>
      %15 = arith.addf %12, %14 : vector<128x512xf32>
      %16 = arith.truncf %15 : vector<128x512xf32> to vector<128x512xbf16>
      %c0_14 = arith.constant 0 : index
      %c0_15 = arith.constant 0 : index
      %17 = vector.load %arg6[%c0_14, %c0_15] : memref<128x512xbf16, #tpu.memory_space<vmem>>, vector<128x512xbf16>
      tpu.vector_store %arg6[%c0_14, %c0_15], %16 {strides = array<i32>} : memref<128x512xbf16, #tpu.memory_space<vmem>>, vector<128x512xbf16>,
    } else {
    }
    return
  }
  func.func @transform_0(%arg0: i32, %arg1: i32, %arg2: i32) -> (i32, i32) {
    %c0_i32 = arith.constant 0 : i32
    return %arg0, %arg2 : i32, i32
  }
  func.func @transform_1(%arg0: i32, %arg1: i32, %arg2: i32) -> (i32, i32) {
    %c0_i32 = arith.constant 0 : i32
    return %arg2, %arg1 : i32, i32
  }
  func.func @transform_2(%arg0: i32, %arg1: i32, %arg2: i32) -> (i32, i32) {
    %c0_i32 = arith.constant 0 : i32
    %c0_i32_0 = arith.constant 0 : i32
    return %c0_i32, %arg1 : i32, i32
  }
  func.func @transform_3(%arg0: i32, %arg1: i32, %arg2: i32) -> (i32, i32) {
    %c0_i32 = arith.constant 0 : i32
    return %arg0, %arg1 : i32, i32
  }
}

</mosaic_0001>

<bundles_post_ra>
// kernel: tpu_custom_call.1
= control target key start
LH: loop header
LB: loop body
LE: loop exit
PB: predicated region body
PF: predicated region fallthrough
CT: control target
= control target key end

     0   :  { %8 = vsyncpa [#allocation4], 0  ;;  %s1582_s0 = inlined_call_operand.hbm [shape: bf16[128,128], index: 0, kind: input, shape index: {}]   ;;  %s1583_s1 = inlined_call_operand.hbm [shape: bf16[128,512], index: 1, kind: input, shape index: {}]   ;;  %s1584_s2 = inlined_call_operand.hbm [shape: f32[1,512], index: 2, kind: input, shape index: {}]   ;;  %s1585_s3 = inlined_call_operand.hbm [shape: bf16[128,512], index: 3, kind: output, shape index: {}]  }
   0x1   :  { %9 = vsyncpa [#allocation7], 0 }
   0x2   :  { %10 = vsyncpa [#allocation5], 0  ;;  %s1447_s12 = smov [#allocation6]  }
   0x3   :  { %s28_s13 = sshll.u32 %s1447_s12, 4  ;;  %s29_s13 = int_to_ptr.vmem [resolvable:$true] %s28_s13 }
   0x4   :  { %s1369_s14 = scalar_lea.vmem %s29_s13, 4096  ;;  %p1374_p1 = scmp.lt.s32.totalorder %s29_s13, %s29_s13 }
   0x5   :  { %p1370_p0 = scmp.ne.s32.totalorder %s29_s13, %s1369_s14  ;;  %p1375_p2 = scmp.lt.s32.totalorder %s1369_s14, %s1369_s14 }
   0x7   :  { %p1376_p3 = por %p1375_p2, %p1374_p1 }
   0x9   :  { %p1377_p4 = pnand %p1376_p3, %p1370_p0 }
   0xb   :  { %1380 = shalt.err (!%p1377_p4)
}
   0xc   :  { %s1448_s15 = smov 256   ;;  %s1449_s16 = smov 16  }
   0xd   :  { %34 = dma.hbm_to_vmem [thread:$0]  %s1583_s1, 4096, %s29_s13, [#allocation7], %s1448_s15, %s1448_s15, %s1449_s16  }
   0xe   :  { %s1450_s19 = smov [#allocation3]  }
   0xf   :  { %s16_s20 = sshll.u32 %s1450_s19, 4  ;;  %s17_s20 = int_to_ptr.vmem [resolvable:$true] %s16_s20 }
  0x10   :  { %s1389_s21 = scalar_lea.vmem %s17_s20, 1024  ;;  %p1394_p6 = scmp.lt.s32.totalorder %s17_s20, %s17_s20 }
  0x11   :  { %p1390_p5 = scmp.ne.s32.totalorder %s17_s20, %s1389_s21  ;;  %p1395_p7 = scmp.lt.s32.totalorder %s1389_s21, %s1389_s21 }
  0x13   :  { %p1396_p8 = por %p1395_p7, %p1394_p6 }
  0x15   :  { %p1397_p9 = pnand %p1396_p8, %p1390_p5 }
  0x17   :  { %1400 = shalt.err (!%p1397_p9)
}
  0x18   :  { %s1451_s22 = smov 64   ;;  %s1452_s23 = smov 4  }
  0x19   :  { %22 = dma.hbm_to_vmem [thread:$0]  %s1582_s0, 1024, %s17_s20, [#allocation4], %s1451_s22, %s1451_s22, %s1452_s23  }
  0x1a   :  { %s1453_s26 = smov [#allocation8]  }
  0x1b   :  { %s41_s27 = sshll.u32 %s1453_s26, 4  ;;  %s42_s27 = int_to_ptr.vmem [resolvable:$true] %s41_s27 }
  0x1c   :  { %s1409_s1 = scalar_lea.vmem %s42_s27, 64  ;;  %p1414_p11 = scmp.lt.s32.totalorder %s42_s27, %s42_s27 }
  0x1d   :  { %p1410_p10 = scmp.ne.s32.totalorder %s42_s27, %s1409_s1  ;;  %p1415_p12 = scmp.lt.s32.totalorder %s1409_s1, %s1409_s1 }
  0x1f   :  { %p1416_p13 = por %p1415_p12, %p1414_p11 }
  0x21   :  { %p1417_p0 = pnand %p1416_p13, %p1410_p10 }
  0x23   :  { %1420 = shalt.err (!%p1417_p0)
}
  0x24   :  { %44 = dma.hbm_to_vmem [thread:$0]  %s1584_s2, 64, %s42_s27, [#allocation7]  }
  0x25   :  { %1441 = dma.done.wait [#allocation4], 1024  }
  0x26   :  { %1442 = vsyncadd [#allocation4], 4294966272 }
  0x27   :  { %1443 = dma.done.wait [#allocation7], 4160  }
  0x28   :  { %1444 = vsyncadd [#allocation7], 4294963136  ;;  %v1454_v0 = vmov 0   ;;  %v1305_v1 = vld [vmem:[#allocation6 + $0xe4] ss:$16 sps:$4 sm:$0xff]   ;;  %v1354_v34 = vld [vmem:[#allocation3 + $0x8] sm:$0xff]   ;;  %v866_v41 = vlaneseq }
  0x29   :  { %475 = vmatprep.mubr.bf16.mxu0 %v1454_v0  ;;  %588 = vmatprep.mubr.bf16.mxu1 %v1454_v0  ;;  %v1307_v2 = vld [vmem:[#allocation6 + $0xec] ss:$16 sps:$4 sm:$0xff]   ;;  %v1309_v3 = vld [vmem:[#allocation6 + $0xe0] ss:$16 sps:$4 sm:$0xff]   ;;  %v1310_v4 = vld [vmem:[#allocation6 + $0xe8] ss:$16 sps:$4 sm:$0xff]  }
  0x2a   :  { %443 = vmatprep.subr.bf16.mxu0 %v1305_v1  ;;  %556 = vmatprep.subr.bf16.mxu1 %v1307_v2  ;;  %v1311_v5 = vld [vmem:[#allocation6 + $0xc4] ss:$16 sps:$4 sm:$0xff]   ;;  %v1313_v6 = vld [vmem:[#allocation6 + $0xcc] ss:$16 sps:$4 sm:$0xff]   ;;  %v1315_v7 = vld [vmem:[#allocation6 + $0xc0] ss:$16 sps:$4 sm:$0xff]  }
  0x2b   :  { %444 = vmatpush1.bf16.msra.mxu0 %v1309_v3  ;;  %557 = vmatpush1.bf16.msra.mxu1 %v1310_v4  ;;  %v1316_v8 = vld [vmem:[#allocation6 + $0xc8] ss:$16 sps:$4 sm:$0xff]   ;;  %v1317_v9 = vld [vmem:[#allocation6 + $0xa4] ss:$16 sps:$4 sm:$0xff]   ;;  %v1319_v10 = vld [vmem:[#allocation6 + $0xac] ss:$16 sps:$4 sm:$0xff]  }
  0x2c   :  { %445 = vmatprep.subr.bf16.mxu0 %v1311_v5  ;;  %558 = vmatprep.subr.bf16.mxu1 %v1313_v6  ;;  %v1321_v11 = vld [vmem:[#allocation6 + $0xa0] ss:$16 sps:$4 sm:$0xff]   ;;  %v1322_v12 = vld [vmem:[#allocation6 + $0xa8] ss:$16 sps:$4 sm:$0xff]   ;;  %v1323_v13 = vld [vmem:[#allocation6 + $0x84] ss:$16 sps:$4 sm:$0xff]  }
  0x2d   :  { %v1325_v14 = vld [vmem:[#allocation6 + $0x8c] ss:$16 sps:$4 sm:$0xff]   ;;  %v1327_v15 = vld [vmem:[#allocation6 + $0x80] ss:$16 sps:$4 sm:$0xff]   ;;  %v1328_v16 = vld [vmem:[#allocation6 + $0x88] ss:$16 sps:$4 sm:$0xff]  }
  0x2e   :  { %v1329_v17 = vld [vmem:[#allocation6 + $0x64] ss:$16 sps:$4 sm:$0xff]   ;;  %v1331_v18 = vld [vmem:[#allocation6 + $0x6c] ss:$16 sps:$4 sm:$0xff]   ;;  %v1333_v19 = vld [vmem:[#allocation6 + $0x60] ss:$16 sps:$4 sm:$0xff]  }
  0x2f   :  { %446 = vmatpush1.bf16.msra.mxu0 %v1315_v7  ;;  %559 = vmatpush1.bf16.msra.mxu1 %v1316_v8  ;;  %v1334_v20 = vld [vmem:[#allocation6 + $0x68] ss:$16 sps:$4 sm:$0xff]   ;;  %v1335_v21 = vld [vmem:[#allocation6 + $0x44] ss:$16 sps:$4 sm:$0xff]   ;;  %v1337_v22 = vld [vmem:[#allocation6 + $0x4c] ss:$16 sps:$4 sm:$0xff]  }
  0x30   :  { %447 = vmatprep.subr.bf16.mxu0 %v1317_v9  ;;  %560 = vmatprep.subr.bf16.mxu1 %v1319_v10  ;;  %v1339_v23 = vld [vmem:[#allocation6 + $0x40] ss:$16 sps:$4 sm:$0xff]   ;;  %v1340_v24 = vld [vmem:[#allocation6 + $0x48] ss:$16 sps:$4 sm:$0xff]   ;;  %v1341_v25 = vld [vmem:[#allocation6 + $0x24] ss:$16 sps:$4 sm:$0xff]  }
  0x31   :  { %v1343_v26 = vld [vmem:[#allocation6 + $0x2c] ss:$16 sps:$4 sm:$0xff]   ;;  %v1345_v27 = vld [vmem:[#allocation6 + $0x20] ss:$16 sps:$4 sm:$0xff]   ;;  %v1346_v28 = vld [vmem:[#allocation6 + $0x28] ss:$16 sps:$4 sm:$0xff]  }
  0x32   :  { %v1347_v29 = vld [vmem:[#allocation6 + $0x4] ss:$16 sps:$4 sm:$0xff]   ;;  %v1349_v30 = vld [vmem:[#allocation6 + $0xc] ss:$16 sps:$4 sm:$0xff]   ;;  %v1351_v31 = vld [vmem:[#allocation6] ss:$16 sps:$4 sm:$0xff]  }
  0x33   :  { %448 = vmatpush1.bf16.msra.mxu0 %v1321_v11  ;;  %561 = vmatpush1.bf16.msra.mxu1 %v1322_v12  ;;  %v1352_v32 = vld [vmem:[#allocation6 + $0x8] ss:$16 sps:$4 sm:$0xff]   ;;  %v1353_v33 = vld [vmem:[#allocation3] sm:$0xff]   ;;  %v1355_v35 = vld [vmem:[#allocation3 + $0x10] sm:$0xff]   ;;  %v867_v42 = vshrl.u32 %v866_v41, 7  ;;  %s1455_s0 = smov [#allocation9]  }
  0x34   :  { %449 = vmatprep.subr.bf16.mxu0 %v1323_v13  ;;  %562 = vmatprep.subr.bf16.mxu1 %v1325_v14  ;;  %v1356_v36 = vld [vmem:[#allocation3 + $0x18] sm:$0xff]   ;;  %v1357_v37 = vld [vmem:[#allocation3 + $0x20] sm:$0xff]   ;;  %v1358_v38 = vld [vmem:[#allocation3 + $0x28] sm:$0xff]   ;;  %s1179_s2 = sshll.u32 %s1455_s0, 4  ;;  %s1180_s2 = int_to_ptr.vmem [resolvable:$true] %s1179_s2 }
  0x35   :  { %v1359_v39 = vld [vmem:[#allocation3 + $0x30] sm:$0xff]   ;;  %v1360_v40 = vld [vmem:[#allocation3 + $0x38] sm:$0xff]   ;;  %v868_v43 = vsub.s32 0, %v867_v42  ;;  %v876_v44 = vsub.s32 2, %v867_v42  ;;  %v872_v45 = vsub.s32 1, %v867_v42  ;;  %v880_v46 = vsub.s32 3, %v867_v42  ;;  %p1426_p2 = scmp.lt.s32.totalorder %s1180_s2, %s1180_s2 }
  0x36   :  { %v864_v47 = vld [vmem:[#allocation8] sm:$0xf]  ;;  %s1421_s30 = scalar_lea.vmem %s1180_s2, 4096 }
  0x37   :  { %450 = vmatpush1.bf16.msra.mxu0 %v1327_v15  ;;  %563 = vmatpush1.bf16.msra.mxu1 %v1328_v16  ;;  %v1504_v48 = vrot.slane %v864_v47, %v868_v43  ;;  %v1506_v49 = vrot.slane %v864_v47, %v876_v44  ;;  %v1508_v50 = vrot.slane %v864_v47, %v872_v45  ;;  %p1422_p1 = scmp.ne.s32.totalorder %s1180_s2, %s1421_s30  ;;  %p1427_p3 = scmp.lt.s32.totalorder %s1421_s30, %s1421_s30 }
  0x38   :  { %451 = vmatprep.subr.bf16.mxu0 %v1329_v17  ;;  %564 = vmatprep.subr.bf16.mxu1 %v1331_v18  ;;  %v1510_v51 = vrot.slane %v864_v47, %v880_v46 }
  0x39   :  { %p1428_p4 = por %p1427_p3, %p1426_p2 }
  0x3b   :  { %452 = vmatpush1.bf16.msra.mxu0 %v1333_v19  ;;  %565 = vmatpush1.bf16.msra.mxu1 %v1334_v20  ;;  %p1429_p5 = pnand %p1428_p4, %p1422_p1 }
  0x3c   :  { %453 = vmatprep.subr.bf16.mxu0 %v1335_v21  ;;  %566 = vmatprep.subr.bf16.mxu1 %v1337_v22 }
  0x3f   :  { %454 = vmatpush1.bf16.msra.mxu0 %v1339_v23  ;;  %567 = vmatpush1.bf16.msra.mxu1 %v1340_v24 }
  0x40   :  { %455 = vmatprep.subr.bf16.mxu0 %v1341_v25  ;;  %568 = vmatprep.subr.bf16.mxu1 %v1343_v26 }
  0x43   :  { %456 = vmatpush1.bf16.msra.mxu0 %v1345_v27  ;;  %569 = vmatpush1.bf16.msra.mxu1 %v1346_v28 }
  0x44   :  { %457 = vmatprep.subr.bf16.mxu0 %v1347_v29  ;;  %570 = vmatprep.subr.bf16.mxu1 %v1349_v30 }
  0x47   :  { %458 = vmatpush1.bf16.msra.mxu0 %v1351_v31  ;;  %571 = vmatpush1.bf16.msra.mxu1 %v1352_v32 }
  0x4a   :  { %476 = vmatmul.mubr.bf16.vlgmr.msra.gmra.mxu0 %v1353_v33  ;;  %589 = vmatmul.mubr.bf16.vlgmr.msra.gmra.mxu1 %v1353_v33 }
  0x4b   :  { %485 = vmatprep.mubr.bf16.mxu0 %v1454_v0  ;;  %598 = vmatprep.mubr.bf16.mxu1 %v1454_v0 }
  0x52   :  { %486 = vmatmul.mubr.bf16.gmra.mxu0 %v1354_v34  ;;  %599 = vmatmul.mubr.bf16.gmra.mxu1 %v1354_v34 }
  0x53   :  { %495 = vmatprep.mubr.bf16.mxu0 %v1454_v0  ;;  %608 = vmatprep.mubr.bf16.mxu1 %v1454_v0 }
  0x5a   :  { %496 = vmatmul.mubr.bf16.gmra.mxu0 %v1355_v35  ;;  %609 = vmatmul.mubr.bf16.gmra.mxu1 %v1355_v35 }
  0x5b   :  { %505 = vmatprep.mubr.bf16.mxu0 %v1454_v0  ;;  %618 = vmatprep.mubr.bf16.mxu1 %v1454_v0 }
  0x62   :  { %506 = vmatmul.mubr.bf16.gmra.mxu0 %v1356_v36  ;;  %619 = vmatmul.mubr.bf16.gmra.mxu1 %v1356_v36 }
  0x63   :  { %515 = vmatprep.mubr.bf16.mxu0 %v1454_v0  ;;  %628 = vmatprep.mubr.bf16.mxu1 %v1454_v0 }
  0x6a   :  { %516 = vmatmul.mubr.bf16.gmra.mxu0 %v1357_v37  ;;  %629 = vmatmul.mubr.bf16.gmra.mxu1 %v1357_v37 }
  0x6b   :  { %525 = vmatprep.mubr.bf16.mxu0 %v1454_v0  ;;  %638 = vmatprep.mubr.bf16.mxu1 %v1454_v0 }
  0x72   :  { %526 = vmatmul.mubr.bf16.gmra.mxu0 %v1358_v38  ;;  %639 = vmatmul.mubr.bf16.gmra.mxu1 %v1358_v38 }
  0x73   :  { %535 = vmatprep.mubr.bf16.mxu0 %v1454_v0  ;;  %648 = vmatprep.mubr.bf16.mxu1 %v1454_v0 }
  0x7a   :  { %536 = vmatmul.mubr.bf16.gmra.mxu0 %v1359_v39  ;;  %649 = vmatmul.mubr.bf16.gmra.mxu1 %v1359_v39 }
  0x7b   :  { %545 = vmatprep.mubr.bf16.mxu0 %v1454_v0  ;;  %658 = vmatprep.mubr.bf16.mxu1 %v1454_v0 }
  0x82   :  { %546 = vmatmul.mubr.bf16.gmra.mxu0 %v1360_v40  ;;  %659 = vmatmul.mubr.bf16.gmra.mxu1 %v1360_v40 }
 0x10a   :  { %v477_v52 = vpop.f32.mrf.mxu0  ;;  %v590_v53 = vpop.f32.mrf.mxu1 }
 0x10b   :  { %v886_v56 = vadd.f32 %v1504_v48, %v477_v52  ;;  %v888_v57 = vadd.f32 %v1506_v49, %v590_v53 }
 0x10c   :  { %v479_v54 = vpop.f32.mrf.mxu0  ;;  %v592_v55 = vpop.f32.mrf.mxu1 }
 0x10d   :  { %v887_v58 = vadd.f32 %v1508_v50, %v479_v54  ;;  %v889_v59 = vadd.f32 %v1510_v51, %v592_v55 }
 0x10e   :  { %v481_v60 = vpop.f32.mrf.mxu0  ;;  %v594_v61 = vpop.f32.mrf.mxu1 }
 0x10f   :  { %v1264_v62 = vpack.c.bf16 %v887_v58, %v886_v56  ;;  %v1265_v63 = vpack.c.bf16 %v889_v59, %v888_v57  ;;  %v890_v2 = vadd.f32 %v1504_v48, %v481_v60  ;;  %v892_v3 = vadd.f32 %v1506_v49, %v594_v61 }
 0x110   :  { %v483_v0 = vpop.f32.mrf.mxu0  ;;  %v596_v1 = vpop.f32.mrf.mxu1 }
 0x111   :  { %1142 = vst [vmem:[#allocation9] sm:$0xff] %v1264_v62  ;;  %1143 = vst [vmem:[#allocation9 + $0x8] sm:$0xff] %v1265_v63  ;;  %v891_v4 = vadd.f32 %v1508_v50, %v483_v0  ;;  %v893_v5 = vadd.f32 %v1510_v51, %v596_v1 }
 0x112   :  { %v487_v6 = vpop.f32.mrf.mxu0  ;;  %v600_v7 = vpop.f32.mrf.mxu1 }
 0x113   :  { %v1266_v8 = vpack.c.bf16 %v891_v4, %v890_v2  ;;  %v1267_v9 = vpack.c.bf16 %v893_v5, %v892_v3  ;;  %v894_v12 = vadd.f32 %v1504_v48, %v487_v6  ;;  %v896_v13 = vadd.f32 %v1506_v49, %v600_v7 }
 0x114   :  { %v489_v10 = vpop.f32.mrf.mxu0  ;;  %v602_v11 = vpop.f32.mrf.mxu1 }
 0x115   :  { %1144 = vst [vmem:[#allocation9 + $0x10] sm:$0xff] %v1266_v8  ;;  %1145 = vst [vmem:[#allocation9 + $0x18] sm:$0xff] %v1267_v9  ;;  %v895_v14 = vadd.f32 %v1508_v50, %v489_v10  ;;  %v897_v15 = vadd.f32 %v1510_v51, %v602_v11 }
 0x116   :  { %v491_v16 = vpop.f32.mrf.mxu0  ;;  %v604_v17 = vpop.f32.mrf.mxu1 }
 0x117   :  { %v1268_v18 = vpack.c.bf16 %v895_v14, %v894_v12  ;;  %v1269_v19 = vpack.c.bf16 %v897_v15, %v896_v13  ;;  %v898_v22 = vadd.f32 %v1504_v48, %v491_v16  ;;  %v900_v23 = vadd.f32 %v1506_v49, %v604_v17 }
 0x118   :  { %v493_v20 = vpop.f32.mrf.mxu0  ;;  %v606_v21 = vpop.f32.mrf.mxu1 }
 0x119   :  { %1146 = vst [vmem:[#allocation9 + $0x20] sm:$0xff] %v1268_v18  ;;  %1147 = vst [vmem:[#allocation9 + $0x28] sm:$0xff] %v1269_v19  ;;  %v899_v24 = vadd.f32 %v1508_v50, %v493_v20  ;;  %v901_v25 = vadd.f32 %v1510_v51, %v606_v21 }
 0x11a   :  { %v497_v26 = vpop.f32.mrf.mxu0  ;;  %v610_v27 = vpop.f32.mrf.mxu1 }
 0x11b   :  { %v1270_v28 = vpack.c.bf16 %v899_v24, %v898_v22  ;;  %v1271_v29 = vpack.c.bf16 %v901_v25, %v900_v23  ;;  %v902_v32 = vadd.f32 %v1504_v48, %v497_v26  ;;  %v904_v33 = vadd.f32 %v1506_v49, %v610_v27 }
 0x11c   :  { %v499_v30 = vpop.f32.mrf.mxu0  ;;  %v612_v31 = vpop.f32.mrf.mxu1 }
 0x11d   :  { %1148 = vst [vmem:[#allocation9 + $0x30] sm:$0xff] %v1270_v28  ;;  %1149 = vst [vmem:[#allocation9 + $0x38] sm:$0xff] %v1271_v29  ;;  %v903_v34 = vadd.f32 %v1508_v50, %v499_v30  ;;  %v905_v35 = vadd.f32 %v1510_v51, %v612_v31 }
 0x11e   :  { %v501_v36 = vpop.f32.mrf.mxu0  ;;  %v614_v37 = vpop.f32.mrf.mxu1 }
 0x11f   :  { %v1272_v38 = vpack.c.bf16 %v903_v34, %v902_v32  ;;  %v1273_v39 = vpack.c.bf16 %v905_v35, %v904_v33  ;;  %v906_v42 = vadd.f32 %v1504_v48, %v501_v36  ;;  %v908_v43 = vadd.f32 %v1506_v49, %v614_v37 }
 0x120   :  { %v503_v40 = vpop.f32.mrf.mxu0  ;;  %v616_v41 = vpop.f32.mrf.mxu1 }
 0x121   :  { %1150 = vst [vmem:[#allocation9 + $0x40] sm:$0xff] %v1272_v38  ;;  %1151 = vst [vmem:[#allocation9 + $0x48] sm:$0xff] %v1273_v39  ;;  %v907_v44 = vadd.f32 %v1508_v50, %v503_v40  ;;  %v909_v45 = vadd.f32 %v1510_v51, %v616_v41 }
 0x122   :  { %v507_v46 = vpop.f32.mrf.mxu0  ;;  %v620_v47 = vpop.f32.mrf.mxu1 }
 0x123   :  { %v1274_v52 = vpack.c.bf16 %v907_v44, %v906_v42  ;;  %v1275_v53 = vpack.c.bf16 %v909_v45, %v908_v43  ;;  %v910_v56 = vadd.f32 %v1504_v48, %v507_v46  ;;  %v912_v57 = vadd.f32 %v1506_v49, %v620_v47 }
 0x124   :  { %v509_v54 = vpop.f32.mrf.mxu0  ;;  %v622_v55 = vpop.f32.mrf.mxu1 }
 0x125   :  { %1152 = vst [vmem:[#allocation9 + $0x50] sm:$0xff] %v1274_v52  ;;  %1153 = vst [vmem:[#allocation9 + $0x58] sm:$0xff] %v1275_v53  ;;  %v911_v58 = vadd.f32 %v1508_v50, %v509_v54  ;;  %v913_v59 = vadd.f32 %v1510_v51, %v622_v55 }
 0x126   :  { %v511_v60 = vpop.f32.mrf.mxu0  ;;  %v624_v61 = vpop.f32.mrf.mxu1 }
 0x127   :  { %v1276_v62 = vpack.c.bf16 %v911_v58, %v910_v56  ;;  %v1277_v63 = vpack.c.bf16 %v913_v59, %v912_v57  ;;  %v914_v2 = vadd.f32 %v1504_v48, %v511_v60  ;;  %v916_v3 = vadd.f32 %v1506_v49, %v624_v61 }
 0x128   :  { %v513_v0 = vpop.f32.mrf.mxu0  ;;  %v626_v1 = vpop.f32.mrf.mxu1 }
 0x129   :  { %1154 = vst [vmem:[#allocation9 + $0x60] sm:$0xff] %v1276_v62  ;;  %1155 = vst [vmem:[#allocation9 + $0x68] sm:$0xff] %v1277_v63  ;;  %v915_v4 = vadd.f32 %v1508_v50, %v513_v0  ;;  %v917_v5 = vadd.f32 %v1510_v51, %v626_v1 }
 0x12a   :  { %v517_v6 = vpop.f32.mrf.mxu0  ;;  %v630_v7 = vpop.f32.mrf.mxu1 }
 0x12b   :  { %v1278_v8 = vpack.c.bf16 %v915_v4, %v914_v2  ;;  %v1279_v9 = vpack.c.bf16 %v917_v5, %v916_v3  ;;  %v918_v12 = vadd.f32 %v1504_v48, %v517_v6  ;;  %v920_v13 = vadd.f32 %v1506_v49, %v630_v7 }
 0x12c   :  { %v519_v10 = vpop.f32.mrf.mxu0  ;;  %v632_v11 = vpop.f32.mrf.mxu1 }
 0x12d   :  { %1156 = vst [vmem:[#allocation9 + $0x70] sm:$0xff] %v1278_v8  ;;  %1157 = vst [vmem:[#allocation9 + $0x78] sm:$0xff] %v1279_v9  ;;  %v919_v14 = vadd.f32 %v1508_v50, %v519_v10  ;;  %v921_v15 = vadd.f32 %v1510_v51, %v632_v11 }
 0x12e   :  { %v521_v16 = vpop.f32.mrf.mxu0  ;;  %v634_v17 = vpop.f32.mrf.mxu1 }
 0x12f   :  { %v1280_v18 = vpack.c.bf16 %v919_v14, %v918_v12  ;;  %v1281_v19 = vpack.c.bf16 %v921_v15, %v920_v13  ;;  %v922_v22 = vadd.f32 %v1504_v48, %v521_v16  ;;  %v924_v23 = vadd.f32 %v1506_v49, %v634_v17 }
 0x130   :  { %v523_v20 = vpop.f32.mrf.mxu0  ;;  %v636_v21 = vpop.f32.mrf.mxu1 }
 0x131   :  { %1158 = vst [vmem:[#allocation9 + $0x80] sm:$0xff] %v1280_v18  ;;  %1159 = vst [vmem:[#allocation9 + $0x88] sm:$0xff] %v1281_v19  ;;  %v923_v24 = vadd.f32 %v1508_v50, %v523_v20  ;;  %v925_v25 = vadd.f32 %v1510_v51, %v636_v21 }
 0x132   :  { %v527_v26 = vpop.f32.mrf.mxu0  ;;  %v640_v27 = vpop.f32.mrf.mxu1 }
 0x133   :  { %v1282_v28 = vpack.c.bf16 %v923_v24, %v922_v22  ;;  %v1283_v29 = vpack.c.bf16 %v925_v25, %v924_v23  ;;  %v926_v32 = vadd.f32 %v1504_v48, %v527_v26  ;;  %v928_v33 = vadd.f32 %v1506_v49, %v640_v27 }
 0x134   :  { %v529_v30 = vpop.f32.mrf.mxu0  ;;  %v642_v31 = vpop.f32.mrf.mxu1 }
 0x135   :  { %1160 = vst [vmem:[#allocation9 + $0x90] sm:$0xff] %v1282_v28  ;;  %1161 = vst [vmem:[#allocation9 + $0x98] sm:$0xff] %v1283_v29  ;;  %v927_v34 = vadd.f32 %v1508_v50, %v529_v30  ;;  %v929_v35 = vadd.f32 %v1510_v51, %v642_v31 }
 0x136   :  { %v531_v36 = vpop.f32.mrf.mxu0  ;;  %v644_v37 = vpop.f32.mrf.mxu1 }
 0x137   :  { %v1284_v38 = vpack.c.bf16 %v927_v34, %v926_v32  ;;  %v1285_v39 = vpack.c.bf16 %v929_v35, %v928_v33  ;;  %v930_v42 = vadd.f32 %v1504_v48, %v531_v36  ;;  %v932_v43 = vadd.f32 %v1506_v49, %v644_v37 }
 0x138   :  { %v533_v40 = vpop.f32.mrf.mxu0  ;;  %v646_v41 = vpop.f32.mrf.mxu1 }
 0x139   :  { %1162 = vst [vmem:[#allocation9 + $0xa0] sm:$0xff] %v1284_v38  ;;  %1163 = vst [vmem:[#allocation9 + $0xa8] sm:$0xff] %v1285_v39  ;;  %v931_v44 = vadd.f32 %v1508_v50, %v533_v40  ;;  %v933_v45 = vadd.f32 %v1510_v51, %v646_v41 }
 0x13a   :  { %v537_v46 = vpop.f32.mrf.mxu0  ;;  %v650_v47 = vpop.f32.mrf.mxu1 }
 0x13b   :  { %v1286_v52 = vpack.c.bf16 %v931_v44, %v930_v42  ;;  %v1287_v53 = vpack.c.bf16 %v933_v45, %v932_v43  ;;  %v934_v56 = vadd.f32 %v1504_v48, %v537_v46  ;;  %v936_v57 = vadd.f32 %v1506_v49, %v650_v47 }
 0x13c   :  { %v539_v54 = vpop.f32.mrf.mxu0  ;;  %v652_v55 = vpop.f32.mrf.mxu1 }
 0x13d   :  { %1164 = vst [vmem:[#allocation9 + $0xb0] sm:$0xff] %v1286_v52  ;;  %1165 = vst [vmem:[#allocation9 + $0xb8] sm:$0xff] %v1287_v53  ;;  %v935_v58 = vadd.f32 %v1508_v50, %v539_v54  ;;  %v937_v59 = vadd.f32 %v1510_v51, %v652_v55 }
 0x13e   :  { %v541_v60 = vpop.f32.mrf.mxu0  ;;  %v654_v61 = vpop.f32.mrf.mxu1 }
 0x13f   :  { %v1288_v62 = vpack.c.bf16 %v935_v58, %v934_v56  ;;  %v1289_v63 = vpack.c.bf16 %v937_v59, %v936_v57  ;;  %v938_v2 = vadd.f32 %v1504_v48, %v541_v60  ;;  %v940_v3 = vadd.f32 %v1506_v49, %v654_v61 }
 0x140   :  { %v543_v0 = vpop.f32.mrf.mxu0  ;;  %v656_v1 = vpop.f32.mrf.mxu1 }
 0x141   :  { %1166 = vst [vmem:[#allocation9 + $0xc0] sm:$0xff] %v1288_v62  ;;  %1167 = vst [vmem:[#allocation9 + $0xc8] sm:$0xff] %v1289_v63  ;;  %v939_v4 = vadd.f32 %v1508_v50, %v543_v0  ;;  %v941_v5 = vadd.f32 %v1510_v51, %v656_v1 }
 0x142   :  { %v547_v6 = vpop.f32.mrf.mxu0  ;;  %v660_v7 = vpop.f32.mrf.mxu1 }
 0x143   :  { %v1290_v8 = vpack.c.bf16 %v939_v4, %v938_v2  ;;  %v1291_v9 = vpack.c.bf16 %v941_v5, %v940_v3  ;;  %v942_v12 = vadd.f32 %v1504_v48, %v547_v6  ;;  %v944_v13 = vadd.f32 %v1506_v49, %v660_v7 }
 0x144   :  { %v549_v10 = vpop.f32.mrf.mxu0  ;;  %v662_v11 = vpop.f32.mrf.mxu1 }
 0x145   :  { %1168 = vst [vmem:[#allocation9 + $0xd0] sm:$0xff] %v1290_v8  ;;  %1169 = vst [vmem:[#allocation9 + $0xd8] sm:$0xff] %v1291_v9  ;;  %v943_v14 = vadd.f32 %v1508_v50, %v549_v10  ;;  %v945_v15 = vadd.f32 %v1510_v51, %v662_v11 }
 0x146   :  { %v551_v16 = vpop.f32.mrf.mxu0  ;;  %v664_v17 = vpop.f32.mrf.mxu1 }
 0x147   :  { %v1292_v18 = vpack.c.bf16 %v943_v14, %v942_v12  ;;  %v1293_v19 = vpack.c.bf16 %v945_v15, %v944_v13  ;;  %v946_v22 = vadd.f32 %v1504_v48, %v551_v16  ;;  %v948_v23 = vadd.f32 %v1506_v49, %v664_v17 }
 0x148   :  { %v553_v20 = vpop.f32.mrf.mxu0  ;;  %v666_v21 = vpop.f32.mrf.mxu1 }
 0x149   :  { %1170 = vst [vmem:[#allocation9 + $0xe0] sm:$0xff] %v1292_v18  ;;  %1171 = vst [vmem:[#allocation9 + $0xe8] sm:$0xff] %v1293_v19  ;;  %v947_v24 = vadd.f32 %v1508_v50, %v553_v20  ;;  %v949_v25 = vadd.f32 %v1510_v51, %v666_v21 }
 0x14b   :  { %v1294_v26 = vpack.c.bf16 %v947_v24, %v946_v22  ;;  %v1295_v27 = vpack.c.bf16 %v949_v25, %v948_v23 }
 0x14d   :  { %1172 = vst [vmem:[#allocation9 + $0xf0] sm:$0xff] %v1294_v26  ;;  %1173 = vst [vmem:[#allocation9 + $0xf8] sm:$0xff] %v1295_v27 }
 0x14e   :  { %1432 = shalt.err (!%p1429_p5)
}
 0x14f   :  { %1185 = dma.vmem_to_hbm [thread:$0]  %s1180_s2, 4096, %s1585_s3, [#allocation5], %s1448_s15, %s1448_s15, %s1449_s16  }
 0x150   :  { %1445 = dma.done.wait [#allocation5], 4096  }
 0x151   :  { %1446 = vsyncadd [#allocation5], 4294963200 }
 0x152   :  { %1189 = vsyncpa [#allocation4], 1 }
 0x153   :  { %1190 = vsyncpa [#allocation7], 1 }
 0x154   :  { %1191 = vsyncpa [#allocation5], 1 }

</bundles_post_ra>
